<compile_context>
chip_gen: v5e
topology: v5e:2x2
jax: 0.10.0
libtpu: 0.0.40
codegen_flags: <defaults>
</compile_context>

<pallas_src>
import functools
import math

import jax
import jax.numpy as jnp
from jax.experimental import pallas as pl
from jax.experimental.pallas import tpu as pltpu


# ----------------------------------------------------------------------------
# Pallas kernel: fused (x @ W_i, x @ W_j) + outer sum for one (b, i-tile, j-tile)
# ----------------------------------------------------------------------------

def _proj_outer_sum_kernel(xi_ref, xj_ref, wi_ref, wj_ref, o_ref):
    # xi_ref: (1, TI, ds) bf16      wi_ref: (ds, dp) bf16
    # xj_ref: (1, TJ, ds) bf16      wj_ref: (ds, dp) bf16
    # o_ref : (1, TI, TJ, dp) f32
    xi = xi_ref[0]                                   # (TI, ds)
    xj = xj_ref[0]                                   # (TJ, ds)
    si = jnp.dot(xi, wi_ref[...], preferred_element_type=jnp.float32)   # (TI, dp) f32
    sj = jnp.dot(xj, wj_ref[...], preferred_element_type=jnp.float32)   # (TJ, dp) f32
    # outer sum epilogue in f32 (free VPU work under the MXU-bound dots)
    o_ref[0] = si[:, None, :] + sj[None, :, :]       # (TI, TJ, dp)


# ----------------------------------------------------------------------------
# Wrapper
# ----------------------------------------------------------------------------

def linear_no_bias_then_outer_sum(x, w, *, tile_i=None, tile_j=None):
    """x: (b, n, ds) float; w: (ds, 2*dp) float (JAX layout: in_dim x out_dim).

    Equivalent to the PyTorch module:
        proj = x @ w            # LinearNoBias(dim, dim_out * 2)
        si, sj = proj.chunk(2, dim=-1)
        out[b, i, j, d] = si[b, i, d] + sj[b, j, d]
    Returns (b, n, n, dp) float32.
    """
    b, n, ds = x.shape
    two_dp = w.shape[1]
    dp = two_dp // 2

    # Tile the i/j (row) axes; keep tiles multiples of 8 (sublane) or equal to n.
    ti = tile_i if tile_i is not None else (n if n <= 128 else 128)
    tj = tile_j if tile_j is not None else (n if n <= 128 else 128)

    # bf16 MXU operands; torch .chunk(2, dim=-1) == column split of the weight.
    xb = x.astype(jnp.bfloat16)
    wi = w[:, :dp].astype(jnp.bfloat16)
    wj = w[:, dp:].astype(jnp.bfloat16)

    grid = (b, pl.cdiv(n, ti), pl.cdiv(n, tj))

    xi_spec = pl.BlockSpec((1, ti, ds), lambda bb, ii, jj: (bb, ii, 0))
    xj_spec = pl.BlockSpec((1, tj, ds), lambda bb, ii, jj: (bb, jj, 0))
    w_spec = pl.BlockSpec((ds, dp), lambda bb, ii, jj: (0, 0))
    o_spec = pl.BlockSpec((1, ti, tj, dp), lambda bb, ii, jj: (bb, ii, jj, 0))

    return pl.pallas_call(
        _proj_outer_sum_kernel,
        out_shape=jax.ShapeDtypeStruct((b, n, n, dp), jnp.float32),
        grid=grid,
        in_specs=[xi_spec, xj_spec, w_spec, w_spec],
        out_specs=o_spec,
        compiler_params=pltpu.CompilerParams(
            dimension_semantics=("parallel", "parallel", "parallel")),
    )(xb, xb, wi, wj)


# ----------------------------------------------------------------------------
# Pure-JAX reference (for correctness check)
# ----------------------------------------------------------------------------

def _reference(x, w):
    proj = jnp.einsum("bnd,de->bne", x.astype(jnp.float32), w.astype(jnp.float32))
    si, sj = jnp.split(proj, 2, axis=-1)
    return si[:, :, None, :] + sj[:, None, :, :]


# ----------------------------------------------------------------------------
# main
# ----------------------------------------------------------------------------

if __name__ == "__main__":
    b, n, dim, dim_out = 2, 8, 32, 128   # dp=128 -> lane-dense output stores

    key = jax.random.PRNGKey(0)
    kx, kw = jax.random.split(key)
    x = jax.random.normal(kx, (b, n, dim), jnp.float32)
    # PyTorch Linear weight is (out, in); we store the transposed (in, out) layout.
    w = jax.random.normal(kw, (dim, 2 * dim_out), jnp.float32) / math.sqrt(dim)

    fwd = jax.jit(linear_no_bias_then_outer_sum)
    out = fwd(x, w)
    jax.block_until_ready(out)

    ref = _reference(x, w)

    assert out.shape == (b, n, n, dim_out), out.shape
    assert out.dtype == jnp.float32
    assert bool(jnp.all(jnp.isfinite(out)))
    # bf16 MXU operands vs f32 reference -> loose-but-tight-enough tolerance
    assert bool(jnp.allclose(out, ref, rtol=2e-2, atol=2e-2)), float(
        jnp.max(jnp.abs(out - ref)))
    print("KERNEL_OK")
</pallas_src>

<mosaic_0001>
module attributes {stable_mosaic.version = 11 : i64} {
  func.func @_proj_outer_sum_kernel(%arg0: i32, %arg1: i32, %arg2: i32, %arg3: memref<1x8x32xbf16, #tpu.memory_space<vmem>>, %arg4: memref<1x8x32xbf16, #tpu.memory_space<vmem>>, %arg5: memref<32x128xbf16, #tpu.memory_space<vmem>>, %arg6: memref<32x128xbf16, #tpu.memory_space<vmem>>, %arg7: memref<1x8x8x128xf32, #tpu.memory_space<vmem>>) attributes {dimension_semantics = [#tpu.dimension_semantics<parallel>, #tpu.dimension_semantics<parallel>, #tpu.dimension_semantics<parallel>], iteration_bounds = array<i64: 2, 1, 1>, scalar_prefetch = 0 : i64, scratch_operands = 0 : i64, tpu.core_type = #tpu.core_type<tc>, window_params = [{transform_indices = @transform_0, window_bounds = array<i64: 1, 8, 32>}, {transform_indices = @transform_1, window_bounds = array<i64: 1, 8, 32>}, {pipeline_mode = #tpu.pipeline_mode<synchronous>, transform_indices = @transform_2, window_bounds = array<i64: 32, 128>}, {pipeline_mode = #tpu.pipeline_mode<synchronous>, transform_indices = @transform_3, window_bounds = array<i64: 32, 128>}, {transform_indices = @transform_4, window_bounds = array<i64: 1, 8, 8, 128>}]} {
    %c0 = arith.constant 0 : index
    %c0_0 = arith.constant 0 : index
    %c0_1 = arith.constant 0 : index
    %0 = vector.load %arg3[%c0, %c0_0, %c0_1] : memref<1x8x32xbf16, #tpu.memory_space<vmem>>, vector<1x8x32xbf16>
    %1 = vector.shape_cast %0 : vector<1x8x32xbf16> to vector<8x32xbf16>
    %c0_2 = arith.constant 0 : index
    %c0_3 = arith.constant 0 : index
    %c0_4 = arith.constant 0 : index
    %2 = vector.load %arg4[%c0_2, %c0_3, %c0_4] : memref<1x8x32xbf16, #tpu.memory_space<vmem>>, vector<1x8x32xbf16>
    %3 = vector.shape_cast %2 : vector<1x8x32xbf16> to vector<8x32xbf16>
    %c0_5 = arith.constant 0 : index
    %c0_6 = arith.constant 0 : index
    %4 = vector.load %arg5[%c0_5, %c0_6] : memref<32x128xbf16, #tpu.memory_space<vmem>>, vector<32x128xbf16>
    %cst = arith.constant dense<0.000000e+00> : vector<8x128xf32>
    %5 = tpu.matmul %1, %4, %cst {dimension_numbers = #tpu.dot_dimension_numbers<[1], [0], [0], [1], [0, 0, 1, 1], [], []>} : vector<8x32xbf16>, vector<32x128xbf16>, vector<8x128xf32> -> vector<8x128xf32>
    %c0_7 = arith.constant 0 : index
    %c0_8 = arith.constant 0 : index
    %6 = vector.load %arg6[%c0_7, %c0_8] : memref<32x128xbf16, #tpu.memory_space<vmem>>, vector<32x128xbf16>
    %cst_9 = arith.constant dense<0.000000e+00> : vector<8x128xf32>
    %7 = tpu.matmul %3, %6, %cst_9 {dimension_numbers = #tpu.dot_dimension_numbers<[1], [0], [0], [1], [0, 0, 1, 1], [], []>} : vector<8x32xbf16>, vector<32x128xbf16>, vector<8x128xf32> -> vector<8x128xf32>
    %8 = vector.shape_cast %5 : vector<8x128xf32> to vector<8x1x128xf32>
    %9 = vector.shape_cast %7 : vector<8x128xf32> to vector<1x8x128xf32>
    %10 = vector.broadcast %8 : vector<8x1x128xf32> to vector<8x8x128xf32>
    %11 = vector.broadcast %9 : vector<1x8x128xf32> to vector<8x8x128xf32>
    %12 = arith.addf %10, %11 : vector<8x8x128xf32>
    %c0_10 = arith.constant 0 : index
    %c0_11 = arith.constant 0 : index
    %c0_12 = arith.constant 0 : index
    %c0_13 = arith.constant 0 : index
    %13 = vector.load %arg7[%c0_10, %c0_11, %c0_12, %c0_13] : memref<1x8x8x128xf32, #tpu.memory_space<vmem>>, vector<1x8x8x128xf32>
    %14 = vector.shape_cast %13 : vector<1x8x8x128xf32> to vector<8x8x128xf32>
    %15 = vector.shape_cast %12 : vector<8x8x128xf32> to vector<1x8x8x128xf32>
    tpu.vector_store %arg7[%c0_10, %c0_11, %c0_12, %c0_13], %15 {strides = array<i32>} : memref<1x8x8x128xf32, #tpu.memory_space<vmem>>, vector<1x8x8x128xf32>,
    return
  }
  func.func @transform_0(%arg0: i32, %arg1: i32, %arg2: i32) -> (i32, i32, i32) {
    %c0_i32 = arith.constant 0 : i32
    %c0_i32_0 = arith.constant 0 : i32
    return %arg0, %arg1, %c0_i32 : i32, i32, i32
  }
  func.func @transform_1(%arg0: i32, %arg1: i32, %arg2: i32) -> (i32, i32, i32) {
    %c0_i32 = arith.constant 0 : i32
    %c0_i32_0 = arith.constant 0 : i32
    return %arg0, %arg2, %c0_i32 : i32, i32, i32
  }
  func.func @transform_2(%arg0: i32, %arg1: i32, %arg2: i32) -> (i32, i32) {
    %c0_i32 = arith.constant 0 : i32
    %c0_i32_0 = arith.constant 0 : i32
    %c0_i32_1 = arith.constant 0 : i32
    return %c0_i32, %c0_i32_0 : i32, i32
  }
  func.func @transform_3(%arg0: i32, %arg1: i32, %arg2: i32) -> (i32, i32) {
    %c0_i32 = arith.constant 0 : i32
    %c0_i32_0 = arith.constant 0 : i32
    %c0_i32_1 = arith.constant 0 : i32
    return %c0_i32, %c0_i32_0 : i32, i32
  }
  func.func @transform_4(%arg0: i32, %arg1: i32, %arg2: i32) -> (i32, i32, i32, i32) {
    %c0_i32 = arith.constant 0 : i32
    %c0_i32_0 = arith.constant 0 : i32
    return %arg0, %arg1, %arg2, %c0_i32 : i32, i32, i32, i32
  }
}

</mosaic_0001>

<bundles_post_ra>
// kernel: linear_no_bias_then_outer_sum.1
= control target key start
LH: loop header
LB: loop body
LE: loop exit
PB: predicated region body
PF: predicated region fallthrough
CT: control target
= control target key end

     0   :  { %9 = vsyncpa [#allocation3], 0  ;;  %s794_s0 = inlined_call_operand.vmem [shape: bf16[2,8,32], index: 0, kind: input, shape index: {}, may-alias: {0,1}]   ;;  %s795_s1 = inlined_call_operand.vmem [shape: bf16[2,8,32], index: 1, kind: input, shape index: {}, may-alias: {0,1}]   ;;  %s796_s2 = inlined_call_operand.vmem [shape: bf16[32,128], index: 2, kind: input, shape index: {}]   ;;  %s797_s3 = inlined_call_operand.vmem [shape: bf16[32,128], index: 3, kind: input, shape index: {}]   ;;  %s798_s4 = inlined_call_operand.hbm [shape: f32[2,8,8,128], index: 4, kind: output, shape index: {}]  }
   0x1   :  { %11 = vsyncpa [#allocation3 + $0x1], 0  ;;  %s678_s15 = smov 0   ;;  %s680_s16 = smov 0  }
   0x2   :  { %s682_s17 = smov 0   ;;  %s684_s18 = smov 0  }
   0x3   :  { %s686_s19 = smov 0   ;;  %s688_s20 = smov 0  }
   0x4 LB: > { %s478_s21 = sadd.s32 4294967295, %s649_s20   ;;  %s479_s22 = sadd.s32 4294967294, %s649_s20   ;;  %s649_s20 = sphi %s688_s20, %s17_s20   ;;  %s645_s19 = sphi %s686_s19, %s805_s19   ;;  %s641_s18 = sphi %s684_s18, %s804_s18   ;;  %s637_s17 = sphi %s682_s17, %s803_s17   ;;  %s633_s16 = sphi %s680_s16, %s802_s16   ;;  %s629_s15 = sphi %s678_s15, %s801_s15  }
   0x5   : > { %s36_s23 = sadd.s32 1, %s645_s19  ;;  %s145_s24 = sadd.s32 1, %s637_s17 }
   0x6   : > { %p38_p0 = scmp.ge.s32.totalorder %s36_s23, 2  ;;  %p155_p1 = scmp.ne.s32.totalorder %s637_s17, %s633_s16 }
   0x7   : > { %p156_p2 = scmp.eq.s32.totalorder %s478_s21, 1  ;;  %p161_p3 = scmp.ne.s32.totalorder %s633_s16, %s629_s15 }
   0x8   : > { %s807_s23 = smov (%p38_p0, %s36_s23), 0  ;;  %p162_p5 = scmp.eq.s32.totalorder %s479_s22, 1 }
   0x9   : > { %p718_p4 = por %p156_p2, %p155_p1  ;;  %s138_s26 = ssub.s32 %s645_s19, %s807_s23 }
   0xa   : > { %p482_p6 = scmp.ge.s32.totalorder %s649_s20, 1  ;;  %p143_p7 = scmp.eq.s32.totalorder %s138_s26, 0 }
   0xb   : > { %p725_p8 = por %p162_p5, %p161_p3  ;;  %p206_p9 = scmp.lt.s32.totalorder %s649_s20, 3 }
   0xc   : > { %s731_s28 = scalar_select %p143_p7, %s637_s17, %s145_s24  }
   0xd   : > { %p207_p10 = pnand %p482_p6, %p206_p9 }
   0xe   : > { %p241_p11 = scmp.lt.s32.totalorder (!%p207_p10), %s641_s18, 1  ;;  %s238_s29 = sand.u32 (!%p207_p10), 1, %s633_s16  }
   0xf   : > { %210 = sbr.rel (%p207_p10) target bundleno = 170 (0xaa), region = 36  ;;  %s483_s30 = sshll.u32 (!%p207_p10), %s238_s29, 6 }
  0x10   : > { %s513_s5 = sshll.u32 (!%p207_p10), %s641_s18, 6  ;;  %s591_s22 = scalar_lea.hbm (!%p207_p10), %s798_s4, 128 }
  0x11   : > { %s379_s8 = scalar_lea.hbm (!%p207_p10), %s798_s4, %s513_s5 }
  0x12   : > { %s382_s10 = sshll.u32 (!%p207_p10), %s379_s8, 4  ;;  %s383_s10 = int_to_ptr.hbm [resolvable:$true] %s382_s10 }
  0x14   : > { %v510_v0 = vld [vmem:[%s796_s2 + $0x8] sm:$0xff]  ;;  %v509_v2 = vld [vmem:[%s796_s2] sm:$0xff]  ;;  %s242_s11 = scalar_select %p241_p11, %s641_s18, 1  ;;  %vm275_vm0 = vcmask 261120  }
  0x15   : > { %v512_v1 = vld [vmem:[%s797_s3 + $0x8] sm:$0xff]  ;;  %285 = vmatpush.bf16.msra.mxu0 %v510_v0  ;;  %v511_v3 = vld [vmem:[%s797_s3] sm:$0xff]  ;;  %s240_s18 = scalar_lea.vmem [#allocation2], %s483_s30 }
  0x16   : > { %317 = vmatpush.bf16.msra.mxu1 %v512_v1  ;;  %s484_s12 = sshll.u32 %s242_s11, 2  ;;  %s380_s9 = sshll.u32 %s240_s18, 4  ;;  %s381_s9 = int_to_ptr.vmem [resolvable:$true] %s380_s9 }
  0x17   : > { %s247_s21 = scalar_lea.vmem %s794_s0, %s484_s12  ;;  %s254_s26 = scalar_lea.vmem %s795_s1, %s484_s12 }
  0x18   : > { %v257_v4 = vld [vmem:[%s247_s21] sm:$0xf]  ;;  %s365_s11 = scalar_lea.sflag [#allocation3], %s238_s29  ;;  %s585_s12 = sshra.s32 %s383_s10, 4  ;;  %s586_s12 = int_to_ptr.hbm [resolvable:$true] %s585_s12 }
  0x19   : > { %286 = vmatpush.bf16.msra.mxu0 %v509_v2  ;;  %v258_v5 = vld [vmem:[%s254_s26] sm:$0xf]  ;;  %s587_s13 = scalar_lea.hbm %s586_s12, 64  ;;  %p592_p1 = scmp.lt.s32.totalorder %s586_s12, %s798_s4 }
  0x1a   : > { %318 = vmatpush.bf16.msra.mxu1 %v511_v3  ;;  %p588_p12 = scmp.ne.s32.totalorder %s586_s12, %s587_s13  ;;  %p593_p2 = scmp.lt.s32.totalorder %s591_s22, %s587_s13 }
  0x1c   : > { %494 = vmatmul.msk.bf16.vlgmr.msra.gmra.mxu0 %vm275_vm0, %v257_v4  ;;  %p589_p13 = pnand %p588_p12, %p718_p4  ;;  %p594_p3 = por %p593_p2, %p592_p1 }
  0x1d   : > { %503 = vmatmul.msk.bf16.vlgmr.msra.gmra.mxu1 %vm275_vm0, %v258_v5 }
  0x1e   : > { %p590_p0 = pneg %p589_p13 }
  0x20   : > { %p595_p5 = pnand %p594_p3, %p590_p0 }
  0x99   : > { %v288_v6 = vpop.f32.mrf.mxu0 }
  0x9a   : > { %v320_v7 = vpop.f32.mrf.mxu1  ;;  %v325_v8 = vrot.slane %v288_v6, 1  ;;  %v326_v9 = vrot.slane %v288_v6, 2  ;;  %v327_v10 = vrot.slane %v288_v6, 3  ;;  %v328_v11 = vrot.slane %v288_v6, 4 }
  0x9b   : > { %v329_v12 = vrot.slane %v288_v6, 5  ;;  %v330_v13 = vrot.slane %v288_v6, 6  ;;  %v331_v14 = vrot.slane %v288_v6, 7  ;;  %v332_v15 = vperm.slane %v288_v6, 0 }
  0x9c   : > { %v333_v16 = vperm.slane %v325_v8, 0  ;;  %v334_v17 = vperm.slane %v326_v9, 0  ;;  %v335_v18 = vperm.slane %v327_v10, 0  ;;  %v336_v19 = vperm.slane %v328_v11, 0 }
  0x9d   : > { %v337_v20 = vperm.slane %v329_v12, 0  ;;  %v338_v21 = vperm.slane %v330_v13, 0  ;;  %v348_v22 = vadd.f32 %v332_v15, %v320_v7  ;;  %v339_v23 = vperm.slane %v331_v14, 0 }
  0x9e   : > { %v349_v24 = vadd.f32 %v333_v16, %v320_v7  ;;  %v350_v25 = vadd.f32 %v334_v17, %v320_v7  ;;  %v351_v26 = vadd.f32 %v335_v18, %v320_v7  ;;  %v352_v27 = vadd.f32 %v336_v19, %v320_v7 }
  0x9f   : > { %356 = vst [vmem:[%s240_s18] sm:$0xff] %v348_v22  ;;  %v353_v28 = vadd.f32 %v337_v20, %v320_v7  ;;  %v354_v29 = vadd.f32 %v338_v21, %v320_v7  ;;  %v355_v32 = vadd.f32 %v339_v23, %v320_v7 }
  0xa0   : > { %357 = vst [vmem:[%s240_s18 + $0x8] sm:$0xff] %v349_v24 }
  0xa1   : > { %358 = vst [vmem:[%s240_s18 + $0x10] sm:$0xff] %v350_v25  ;;  %v290_v30 = vpop.f32.mrf.mxu0 }
  0xa2   : > { %v322_v31 = vpop.f32.mrf.mxu1  ;;  %359 = vst [vmem:[%s240_s18 + $0x18] sm:$0xff] %v351_v26 }
  0xa3   : > { %360 = vst [vmem:[%s240_s18 + $0x20] sm:$0xff] %v352_v27 }
  0xa4   : > { %361 = vst [vmem:[%s240_s18 + $0x28] sm:$0xff] %v353_v28 }
  0xa5   : > { %362 = vst [vmem:[%s240_s18 + $0x30] sm:$0xff] %v354_v29 }
  0xa6   : > { %363 = vst [vmem:[%s240_s18 + $0x38] sm:$0xff] %v355_v32 }
  0xa7   : > { %598 = shalt.err (!%p595_p5)
}
  0xa8   : > { %s651_s29 = smov 128   ;;  %s652_s30 = smov 8  }
  0xa9   : > { %514 = dma.vmem_to_hbm [thread:$0]  (%p718_p4), %s381_s9, 1024, %s383_s10, %s365_s11, %s651_s29, %s651_s29, %s652_s30  }
  0xaa PF: > { %p520_p6 = scmp.ge.s32.totalorder %s649_s20, 2  ;;  %s397_s5 = sand.u32 1, %s629_s15  }
  0xab   : > { %s398_s6 = scalar_lea.sflag [#allocation3], %s397_s5 }
  0xac   : > { %p517_p7 = pnand %p520_p6, %p725_p8 }
  0xae   : > { %p518_p9 = pneg %p517_p7 }
  0xb0   : > { %624 = dma.done.wait (%p518_p9), %s398_s6, 1024  }
  0xb1   : > { %626 = vsyncadd (%p518_p9), %s398_s6, 4294966272  ;;  %s17_s20 = sadd.s32 1, %s649_s20   ;;  %s801_s15 = smov %s633_s16 }
  0xb2   : > { %p14_p10 = scmp.ge.s32.totalorder %s17_s20, 4   ;;  %s802_s16 = smov %s637_s17 }
  0xb3   : > { %s803_s17 = smov %s731_s28  ;;  %s804_s18 = smov %s645_s19 }
  0xb4   : > { %s805_s19 = smov %s807_s23  ;;  %16 = sbr.rel (!%p14_p10) target bundleno = 4 (0x4), region = 74 }
  0xb9   :  { %404 = vsyncpa [#allocation3], 1 }
  0xba   :  { %406 = vsyncpa [#allocation3 + $0x1], 1 }

</bundles_post_ra>
